<compile_context>
chip_gen: v5e
topology: v5e:2x2
jax: 0.10.0
libtpu: 0.0.40
codegen_flags: <defaults>
</compile_context>

<pallas_src>
import numpy as np
import jax
import jax.numpy as jnp
from jax.experimental import pallas as pl
from jax.experimental.pallas import tpu as pltpu


def _samples_per_block(N, C, HW, in_itemsize, out_itemsize, budget_bytes):
    """Samples per grid step: the largest group that (a) fits the VMEM budget
    with double buffering of the 4 tensor blocks, (b) divides N, and (c) leaves
    >= 2 grid steps when N >= 2 so the 'parallel' axis can be sharded across
    both v7x TensorCores."""
    per_sample = C * HW * (2 * in_itemsize + 2 * out_itemsize) * 2  # dbl-buffered
    sb = max(1, min(N, budget_bytes // max(per_sample, 1)))
    if N >= 2:
        sb = min(sb, max(1, N // 2))
    while N % sb:
        sb -= 1
    return sb


def learnable_channel_exchange2(x1, x2, weight, threshold):
    """x1, x2: (N, C, H, W); weight: (C, C) Linear weight (out, in); threshold: scalar."""
    N, C, H, W = x1.shape
    HW = H * W
    out_dtype = jnp.promote_types(x1.dtype, jnp.float32)  # PyTorch promotes: ex is f32

    x1c = x1.reshape(N, C, HW)
    x2c = x2.reshape(N, C, HW)
    thr = jnp.asarray(threshold, jnp.float32).reshape(1)

    in_item = jnp.dtype(x1.dtype).itemsize
    out_item = jnp.dtype(out_dtype).itemsize
    SB = _samples_per_block(N, C, HW, in_item, out_item, budget_bytes=24 << 20)
    # TODO(synk): for shapes where even a single (1, C, HW) sample block exceeds
    # the VMEM budget, a spatially-tiled variant (streaming HW tiles into a
    # VMEM-resident per-sample scratch) would be needed.

    inv_hw = 1.0 / float(HW)

    def fused_kernel(thr_ref, w_ref, x1_ref, x2_ref, o1_ref, o2_ref):
        # Whole sample group resident in VMEM: (SB, C, HW), promoted to f32.
        xf1 = x1_ref[...].astype(jnp.float32)
        xf2 = x2_ref[...].astype(jnp.float32)

        # --- per-sample exchange factor (from the resident copies; no HBM re-read)
        m1 = jnp.sum(xf1, axis=-1) * inv_hw                     # (SB, C)
        m2 = jnp.sum(xf2, axis=-1) * inv_hw
        m = jnp.concatenate([m1, m2], axis=0)                   # (2*SB, C): one batched matmul
        w = w_ref[...].astype(jnp.float32)                      # (C, C), (out, in)
        a = jax.lax.dot_general(m, w, (((1,), (1,)), ((), ())),
                                preferred_element_type=jnp.float32)   # y = m @ W^T
        a = a - jnp.max(a, axis=-1, keepdims=True)              # softmax over channels (lanes)
        e = jnp.exp(a)
        att = e / jnp.sum(e, axis=-1, keepdims=True)

        d = att[:SB, :] - att[SB:, :]                                   # (SB, C)
        dist = jnp.sqrt(jnp.sum(d * d, axis=-1, keepdims=True))         # (SB, 1)
        median = dist        # torch.median over a size-1 dim is the value itself
        ex = jax.nn.sigmoid(thr_ref[0] * (dist - median))               # (SB, 1)
        ex_b = ex[:, :, None]                                           # (SB, 1, 1)

        # --- diff-form blend in the promoted dtype
        diff = xf2 - xf1
        o1_ref[...] = (xf1 + ex_b * diff).astype(o1_ref.dtype)
        o2_ref[...] = (xf2 - ex_b * diff).astype(o2_ref.dtype)

    # Explicit scoped-VMEM limit: 4 tensor blocks double-buffered + weight.
    block_bytes = SB * C * HW * (2 * in_item + 2 * out_item) * 2 + C * C * 4 * 2
    vmem_limit = int(min(48 << 20, max(16 << 20, 4 * block_bytes)))

    o1c, o2c = pl.pallas_call(
        fused_kernel,
        out_shape=(jax.ShapeDtypeStruct((N, C, HW), out_dtype),
                   jax.ShapeDtypeStruct((N, C, HW), out_dtype)),
        grid_spec=pltpu.PrefetchScalarGridSpec(
            num_scalar_prefetch=0,
            grid=(N // SB,),
            in_specs=[
                pl.BlockSpec(memory_space=pltpu.MemorySpace.SMEM),   # threshold scalar
                pl.BlockSpec((C, C), lambda g: (0, 0)),              # weight, DMA'd once
                pl.BlockSpec((SB, C, HW), lambda g: (g, 0, 0)),      # x1 sample group
                pl.BlockSpec((SB, C, HW), lambda g: (g, 0, 0)),      # x2 sample group
            ],
            out_specs=[
                pl.BlockSpec((SB, C, HW), lambda g: (g, 0, 0)),
                pl.BlockSpec((SB, C, HW), lambda g: (g, 0, 0)),
            ],
        ),
        compiler_params=pltpu.CompilerParams(
            dimension_semantics=("parallel",),
            vmem_limit_bytes=vmem_limit),
    )(thr, weight, x1c, x2c)

    return o1c.reshape(N, C, H, W), o2c.reshape(N, C, H, W)


def _reference(x1, x2, weight, threshold):
    """Pure-JAX replica of the PyTorch forward for verification."""
    def att(x):
        m = x.mean(axis=(2, 3))                 # (N, C)
        a = m @ weight.T                        # Linear, no bias
        a = jax.nn.softmax(a, axis=1)
        return a[:, :, None, None]              # (N, C, 1, 1)

    a1, a2 = att(x1), att(x2)
    dist = jnp.sqrt(jnp.sum((a1 - a2) ** 2, axis=1, keepdims=True))  # (N,1,1,1)
    median = dist                               # median over size-1 dim
    ex = jax.nn.sigmoid(threshold * (dist - median))
    return ex * x2 + (1 - ex) * x1, ex * x1 + (1 - ex) * x2


if __name__ == "__main__":
    N, C, H, W = 2, 4, 16, 16
    key = jax.random.PRNGKey(0)
    k1, k2, kw = jax.random.split(key, 3)

    x1 = jax.random.normal(k1, (N, C, H, W), dtype=jnp.float32)
    x2 = jax.random.normal(k2, (N, C, H, W), dtype=jnp.float32)

    # nn.Linear default-style uniform(-1/sqrt(C), 1/sqrt(C)).
    bound = 1.0 / np.sqrt(C)
    weight = jax.random.uniform(kw, (C, C), dtype=jnp.float32,
                                minval=-bound, maxval=bound)
    threshold = jnp.float32(0.5)

    out1, out2 = learnable_channel_exchange2(x1, x2, weight, threshold)
    jax.block_until_ready((out1, out2))

    ref1, ref2 = _reference(x1, x2, weight, threshold)
    np.testing.assert_allclose(np.asarray(out1), np.asarray(ref1), rtol=1e-5, atol=1e-5)
    np.testing.assert_allclose(np.asarray(out2), np.asarray(ref2), rtol=1e-5, atol=1e-5)

    print("KERNEL_OK")
</pallas_src>

<mosaic_0001>
module attributes {stable_mosaic.version = 11 : i64} {
  func.func @fused_kernel(%arg0: i32, %arg1: memref<1xf32, #tpu.memory_space<smem>>, %arg2: memref<4x4xf32, #tpu.memory_space<vmem>>, %arg3: memref<1x4x256xf32, #tpu.memory_space<vmem>>, %arg4: memref<1x4x256xf32, #tpu.memory_space<vmem>>, %arg5: memref<1x4x256xf32, #tpu.memory_space<vmem>>, %arg6: memref<1x4x256xf32, #tpu.memory_space<vmem>>) attributes {dimension_semantics = [#tpu.dimension_semantics<parallel>], iteration_bounds = array<i64: 2>, scalar_prefetch = 0 : i64, scratch_operands = 0 : i64, tpu.core_type = #tpu.core_type<tc>, window_params = [{transform_indices = @transform_0, window_bounds = array<i64: 1>}, {pipeline_mode = #tpu.pipeline_mode<synchronous>, transform_indices = @transform_1, window_bounds = array<i64: 4, 4>}, {transform_indices = @transform_2, window_bounds = array<i64: 1, 4, 256>}, {transform_indices = @transform_3, window_bounds = array<i64: 1, 4, 256>}, {transform_indices = @transform_4, window_bounds = array<i64: 1, 4, 256>}, {transform_indices = @transform_5, window_bounds = array<i64: 1, 4, 256>}]} {
    %c0 = arith.constant 0 : index
    %c0_0 = arith.constant 0 : index
    %c0_1 = arith.constant 0 : index
    %0 = vector.load %arg3[%c0, %c0_0, %c0_1] : memref<1x4x256xf32, #tpu.memory_space<vmem>>, vector<1x4x256xf32>
    %c0_2 = arith.constant 0 : index
    %c0_3 = arith.constant 0 : index
    %c0_4 = arith.constant 0 : index
    %1 = vector.load %arg4[%c0_2, %c0_3, %c0_4] : memref<1x4x256xf32, #tpu.memory_space<vmem>>, vector<1x4x256xf32>
    %cst = arith.constant dense<0.000000e+00> : vector<1x4xf32>
    %2 = vector.multi_reduction <add>, %0, %cst [2] : vector<1x4x256xf32> to vector<1x4xf32>
    %cst_5 = arith.constant 3.906250e-03 : f32
    %3 = vector.broadcast %cst_5 : f32 to vector<1x4xf32>
    %4 = arith.mulf %2, %3 : vector<1x4xf32>
    %cst_6 = arith.constant dense<0.000000e+00> : vector<1x4xf32>
    %5 = vector.multi_reduction <add>, %1, %cst_6 [2] : vector<1x4x256xf32> to vector<1x4xf32>
    %cst_7 = arith.constant 3.906250e-03 : f32
    %6 = vector.broadcast %cst_7 : f32 to vector<1x4xf32>
    %7 = arith.mulf %5, %6 : vector<1x4xf32>
    %8 = tpu.concatenate %4, %7 in 0 : vector<1x4xf32>, vector<1x4xf32> -> vector<2x4xf32>
    %c0_8 = arith.constant 0 : index
    %c0_9 = arith.constant 0 : index
    %9 = vector.load %arg2[%c0_8, %c0_9] : memref<4x4xf32, #tpu.memory_space<vmem>>, vector<4x4xf32>
    %cst_10 = arith.constant dense<0.000000e+00> : vector<2x4xf32>
    %10 = tpu.matmul %8, %9, %cst_10 {dimension_numbers = #tpu.dot_dimension_numbers<[1], [1], [0], [0], [0, 0, 1, 0], [], []>} : vector<2x4xf32>, vector<4x4xf32>, vector<2x4xf32> -> vector<2x4xf32>
    %cst_11 = arith.constant dense<0xFF800000> : vector<2xf32>
    %11 = vector.multi_reduction <maximumf>, %10, %cst_11 [1] : vector<2x4xf32> to vector<2xf32>
    %12 = vector.shape_cast %11 : vector<2xf32> to vector<2x1xf32>
    %13 = vector.broadcast %12 : vector<2x1xf32> to vector<2x4xf32>
    %14 = arith.subf %10, %13 : vector<2x4xf32>
    %15 = math.exp %14 : vector<2x4xf32>
    %cst_12 = arith.constant dense<0.000000e+00> : vector<2xf32>
    %16 = vector.multi_reduction <add>, %15, %cst_12 [1] : vector<2x4xf32> to vector<2xf32>
    %17 = vector.shape_cast %16 : vector<2xf32> to vector<2x1xf32>
    %18 = vector.broadcast %17 : vector<2x1xf32> to vector<2x4xf32>
    %19 = arith.divf %15, %18 : vector<2x4xf32>
    %20 = vector.extract_strided_slice %19 {offsets = [0, 0], sizes = [1, 4], strides = [1, 1]} : vector<2x4xf32> to vector<1x4xf32>
    %21 = vector.extract_strided_slice %19 {offsets = [1, 0], sizes = [1, 4], strides = [1, 1]} : vector<2x4xf32> to vector<1x4xf32>
    %22 = arith.subf %20, %21 : vector<1x4xf32>
    %23 = arith.mulf %22, %22 : vector<1x4xf32>
    %cst_13 = arith.constant dense<0.000000e+00> : vector<1xf32>
    %24 = vector.multi_reduction <add>, %23, %cst_13 [1] : vector<1x4xf32> to vector<1xf32>
    %25 = vector.shape_cast %24 : vector<1xf32> to vector<1x1xf32>
    %26 = math.sqrt %25 : vector<1x1xf32>
    %c0_14 = arith.constant 0 : index
    %27 = memref.load %arg1[%c0_14] : memref<1xf32, #tpu.memory_space<smem>>
    %28 = arith.subf %26, %26 : vector<1x1xf32>
    %29 = vector.broadcast %27 : f32 to vector<1x1xf32>
    %30 = arith.mulf %29, %28 : vector<1x1xf32>
    %31 = arith.negf %30 : vector<1x1xf32>
    %32 = math.exp %31 : vector<1x1xf32>
    %cst_15 = arith.constant 1.000000e+00 : f32
    %33 = vector.broadcast %cst_15 : f32 to vector<1x1xf32>
    %34 = arith.addf %33, %32 : vector<1x1xf32>
    %35 = arith.divf %33, %34 : vector<1x1xf32>
    %36 = vector.shape_cast %35 : vector<1x1xf32> to vector<1x1x1xf32>
    %37 = arith.subf %1, %0 : vector<1x4x256xf32>
    %38 = vector.broadcast %36 : vector<1x1x1xf32> to vector<1x4x256xf32>
    %39 = arith.mulf %38, %37 : vector<1x4x256xf32>
    %40 = arith.addf %0, %39 : vector<1x4x256xf32>
    %c0_16 = arith.constant 0 : index
    %c0_17 = arith.constant 0 : index
    %c0_18 = arith.constant 0 : index
    %41 = vector.load %arg5[%c0_16, %c0_17, %c0_18] : memref<1x4x256xf32, #tpu.memory_space<vmem>>, vector<1x4x256xf32>
    tpu.vector_store %arg5[%c0_16, %c0_17, %c0_18], %40 {strides = array<i32>} : memref<1x4x256xf32, #tpu.memory_space<vmem>>, vector<1x4x256xf32>,
    %42 = vector.broadcast %36 : vector<1x1x1xf32> to vector<1x4x256xf32>
    %43 = arith.mulf %42, %37 : vector<1x4x256xf32>
    %44 = arith.subf %1, %43 : vector<1x4x256xf32>
    %c0_19 = arith.constant 0 : index
    %c0_20 = arith.constant 0 : index
    %c0_21 = arith.constant 0 : index
    %45 = vector.load %arg6[%c0_19, %c0_20, %c0_21] : memref<1x4x256xf32, #tpu.memory_space<vmem>>, vector<1x4x256xf32>
    tpu.vector_store %arg6[%c0_19, %c0_20, %c0_21], %44 {strides = array<i32>} : memref<1x4x256xf32, #tpu.memory_space<vmem>>, vector<1x4x256xf32>,
    return
  }
  func.func @transform_0(%arg0: i32) -> i32 {
    %c0_i32 = arith.constant 0 : i32
    %c0_i32_0 = arith.constant 0 : i32
    return %c0_i32 : i32
  }
  func.func @transform_1(%arg0: i32) -> (i32, i32) {
    %c0_i32 = arith.constant 0 : i32
    %c0_i32_0 = arith.constant 0 : i32
    %c0_i32_1 = arith.constant 0 : i32
    return %c0_i32, %c0_i32_0 : i32, i32
  }
  func.func @transform_2(%arg0: i32) -> (i32, i32, i32) {
    %c0_i32 = arith.constant 0 : i32
    %c0_i32_0 = arith.constant 0 : i32
    %c0_i32_1 = arith.constant 0 : i32
    return %arg0, %c0_i32, %c0_i32_0 : i32, i32, i32
  }
  func.func @transform_3(%arg0: i32) -> (i32, i32, i32) {
    %c0_i32 = arith.constant 0 : i32
    %c0_i32_0 = arith.constant 0 : i32
    %c0_i32_1 = arith.constant 0 : i32
    return %arg0, %c0_i32, %c0_i32_0 : i32, i32, i32
  }
  func.func @transform_4(%arg0: i32) -> (i32, i32, i32) {
    %c0_i32 = arith.constant 0 : i32
    %c0_i32_0 = arith.constant 0 : i32
    %c0_i32_1 = arith.constant 0 : i32
    return %arg0, %c0_i32, %c0_i32_0 : i32, i32, i32
  }
  func.func @transform_5(%arg0: i32) -> (i32, i32, i32) {
    %c0_i32 = arith.constant 0 : i32
    %c0_i32_0 = arith.constant 0 : i32
    %c0_i32_1 = arith.constant 0 : i32
    return %arg0, %c0_i32, %c0_i32_0 : i32, i32, i32
  }
}

</mosaic_0001>

<bundles_post_ra>
// kernel: tpu_custom_call.1
= control target key start
LH: loop header
LB: loop body
LE: loop exit
PB: predicated region body
PF: predicated region fallthrough
CT: control target
= control target key end

     0   :  { %s1174_s0 = inlined_call_operand.<no memory space> [shape: f32[1], index: 0, kind: input, shape index: {}]   ;;  %s1175_s1 = inlined_call_operand.hbm [shape: f32[4,4], index: 1, kind: input, shape index: {}]   ;;  %s1176_s2 = inlined_call_operand.hbm [shape: f32[2,4,256], index: 2, kind: input, shape index: {}]   ;;  %s1177_s3 = inlined_call_operand.hbm [shape: f32[2,4,256], index: 3, kind: input, shape index: {}]   ;;  %s1178_s4 = inlined_call_operand.hbm [shape: f32[2,4,256], index: 4, kind: output, shape index: {0}]   ;;  %s1179_s5 = inlined_call_operand.hbm [shape: f32[2,4,256], index: 5, kind: output, shape index: {1}]  }
   0x1   :  { %11 = sst [smem:[#allocation2]] %s1174_s0 }
   0x2   :  { %12 = vsyncpa [#allocation4], 0 }
   0x3   :  { %13 = vsyncpa [#allocation7], 0 }
   0x4   :  { %15 = vsyncpa [#allocation7 + $0x1], 0 }
   0x5   :  { %16 = vsyncpa [#allocation5], 0 }
   0x6   :  { %18 = vsyncpa [#allocation5 + $0x1], 0 }
   0x7   :  { %19 = vsyncpa [#allocation11], 0 }
   0x8   :  { %21 = vsyncpa [#allocation11 + $0x1], 0  ;;  %s956_s20 = smov 0   ;;  %s958_s21 = smov 0  }
   0x9   :  { %s960_s22 = smov 0   ;;  %s962_s23 = smov 0  }
   0xa LB: > { %s977_s0 = sadd.s32 1, %s920_s23   ;;  %s76_s24 = sadd.s32 1, %s916_s22  ;;  %s920_s23 = sphi %s962_s23, %s1193_s23   ;;  %s916_s22 = sphi %s960_s22, %s1192_s22   ;;  %s912_s21 = sphi %s958_s21, %s1191_s21   ;;  %s908_s20 = sphi %s956_s20, %s1190_s20  }
   0xb   : > { %s73_s25 = ssub.s32 %s920_s23, %s977_s0  ;;  %p83_p0 = scmp.ne.s32.totalorder %s916_s22, %s912_s21 }
   0xc   : > { %p74_p1 = scmp.eq.s32.totalorder %s73_s25, 0  ;;  %p84_p2 = scmp.eq.s32.totalorder %s920_s23, 0 }
   0xd   : > { %p682_p4 = scmp.lt.s32.totalorder %s920_s23, 2  ;;  %s206_s27 = sand.u32 1, %s920_s23  }
   0xe   : > { %s988_s26 = scalar_select %p74_p1, %s916_s22, %s76_s24  }
   0xf   : > { %p85_p5 = por %p84_p2, %p83_p0  ;;  %s208_s28 = sand.u32 1, %s916_s22  }
  0x10   : > { %s995_s29 = sshll.u32 %s208_s28, 3  ;;  %s647_s30 = sshll.u32 %s920_s23, 3 }
  0x11   : > { %s215_s8 = scalar_lea.hbm %s1176_s2, %s647_s30  ;;  %s210_s10 = scalar_lea.vmem [#allocation6], %s995_s29 }
  0x12   : > { %s217_s9 = sshll.u32 %s215_s8, 4  ;;  %s219_s11 = sshll.u32 %s210_s10, 4  ;;  %s218_s9 = int_to_ptr.hbm [resolvable:$true] %s217_s9  ;;  %s220_s11 = int_to_ptr.vmem [resolvable:$true] %s219_s11 }
  0x13   : > { %p1004_p6 = pnand %p682_p4, %p85_p5  ;;  %s1011_s15 = scalar_lea.hbm %s1177_s3, %s647_s30 }
  0x14   : > { %s1013_s16 = scalar_lea.sflag [#allocation7], %s206_s27  ;;  %s728_s17 = sshra.s32 %s218_s9, 4  ;;  %s729_s17 = int_to_ptr.hbm [resolvable:$true] %s728_s17 }
  0x15   : > { %s730_s18 = scalar_lea.hbm %s729_s17, 8  ;;  %p732_p8 = pneg %p1004_p6 }
  0x16   : > { %p731_p7 = scmp.ne.s32.totalorder %s729_s17, %s730_s18  ;;  %s735_s25 = scalar_lea.hbm %s1176_s2, 16 }
  0x17   : > { %p736_p11 = scmp.lt.s32.totalorder %s729_s17, %s1176_s2  ;;  %p737_p12 = scmp.lt.s32.totalorder %s735_s25, %s730_s18 }
  0x18   : > { %p733_p9 = pnand %p732_p8, %p731_p7 }
  0x19   : > { %p738_p13 = por %p737_p12, %p736_p11 }
  0x1a   : > { %p734_p10 = pneg %p733_p9 }
  0x1c   : > { %p739_p1 = pnand %p738_p13, %p734_p10 }
  0x1e   : > { %742 = shalt.err (!%p739_p1)
}
  0x1f   : > { %670 = dma.hbm_to_vmem [thread:$0]  (!%p1004_p6), %s218_s9, 128, %s220_s11, %s1013_s16  }
  0x20   : > { %s1030_s27 = sadd.s32 4294967295, %s920_s23   ;;  %s620_s30 = sadd.s32 4294967294, %s920_s23  }
  0x21   : > { %p89_p2 = scmp.ne.s32.totalorder %s912_s21, %s908_s20  ;;  %p1180_p4 = scmp.eq.s32.totalorder %s1030_s27, 0 }
  0x22   : > { %p139_p5 = scmp.eq.s32.totalorder %s1030_s27, 1  ;;  %p145_p7 = scmp.eq.s32.totalorder %s620_s30, 1 }
  0x23   : > { %p1039_p9 = por %p1180_p4, %p89_p2  ;;  %p621_p10 = scmp.ge.s32.totalorder %s920_s23, 1 }
  0x24   : > { %p1047_p11 = por %p139_p5, %p83_p0  ;;  %p1051_p12 = por %p145_p7, %p89_p2 }
  0x25   : > { %p178_p13 = scmp.lt.s32.totalorder %s920_s23, 3  ;;  %s193_s13 = sshll.u32 %s1175_s1, 4  ;;  %s194_s13 = int_to_ptr.hbm [resolvable:$true] %s193_s13 }
  0x26   : > { %s922_s17 = smov [#allocation3]   ;;  %s237_s19 = sshll.u32 %s1011_s15, 4  ;;  %s238_s19 = int_to_ptr.hbm [resolvable:$true] %s237_s19 }
  0x27   : > { %p1059_p1 = pnand %p621_p10, %p178_p13  ;;  %s195_s18 = sshll.u32 %s922_s17, 4  ;;  %s196_s18 = int_to_ptr.vmem [resolvable:$true] %s195_s18 }
  0x28   : > { %s230_s24 = scalar_lea.vmem [#allocation8], %s995_s29  ;;  %s758_s6 = sshra.s32 %s238_s19, 4  ;;  %s759_s6 = int_to_ptr.hbm [resolvable:$true] %s758_s6 }
  0x29   : > { %p663_p0 = pneg %p1059_p1  ;;  %s239_s25 = sshll.u32 %s230_s24, 4  ;;  %s240_s25 = int_to_ptr.vmem [resolvable:$true] %s239_s25 }
  0x2a   : > { %s760_s30 = scalar_lea.hbm %s759_s6, 8  ;;  %s765_s11 = scalar_lea.hbm %s1177_s3, 16 }
  0x2b   : > { %p1069_p2 = pnand %p663_p0, %p1180_p4  ;;  %p761_p5 = scmp.ne.s32.totalorder %s759_s6, %s760_s30 }
  0x2c   : > { %p766_p13 = scmp.lt.s32.totalorder %s759_s6, %s1177_s3  ;;  %p767_p0 = scmp.lt.s32.totalorder %s765_s11, %s760_s30 }
  0x2d   : > { %p763_p7 = pnand %p761_p5, %p732_p8 }
  0x2e   : > { %p768_p3 = por %p767_p0, %p766_p13 }
  0x2f   : > { %p764_p10 = pneg %p763_p7 }
  0x31   : > { %p769_p4 = pnand %p768_p3, %p764_p10 }
  0x33   : > { %772 = shalt.err (!%p769_p4)
}
  0x34   : > { %673 = dma.hbm_to_vmem [thread:$0]  (!%p1004_p6), %s238_s19, 128, %s240_s25, %s1013_s16  }
  0x35   : > { %666 = dma.hbm_to_vmem [thread:$0]  (!%p1069_p2), %s194_s13, 64, %s196_s18, [#allocation4]  }
  0x36   : > { %248 = sbr.rel (%p1059_p1) target bundleno = 792 (0x318), region = 36  ;;  %p1187_p8 = scmp.eq.s32.totalorder (!%p1059_p1), %s1030_s27, 0 }
  0x3b   : > { %891 = dma.done.wait (%p1187_p8), [#allocation4], 64   ;;  %p1188_p5 = pmov %p1187_p8 }
  0x3c   : > { %s255_s24 = sand.u32 1, %s1030_s27   ;;  %s1095_s6 = sand.u32 1, %s912_s21  }
  0x3d   : > { %893 = vsyncadd (%p1188_p5), [#allocation4], 4294967232  ;;  %s1098_s12 = sshll.u32 %s1095_s6, 3  ;;  %s256_s16 = scalar_lea.sflag [#allocation7], %s255_s24 }
  0x3e   : > { %s259_s13 = scalar_lea.vmem [#allocation6], %s1098_s12 }
  0x3f   : > { %895 = dma.done.wait (%p1039_p9), %s256_s16, 256  }
  0x40   : > { %897 = vsyncadd (%p1039_p9), %s256_s16, 4294967040  ;;  %v1105_v0 = vld [vmem:[%s259_s13] sm:$0xff]  ;;  %s269_s14 = scalar_lea.vmem [#allocation8], %s1098_s12  ;;  %vm315_vm0 = vcmask 1043456   ;;  %v344_v12 = vld [vmem:[#allocation3] sm:$0xf]  ;;  %v335_v14 = vlaneseq }
  0x41   : > { %310 = vst [vmem:[#allocation1] ss:$2 sm:$0xff] %v1105_v0  ;;  %v1109_v1 = vld [vmem:[%s269_s14] sm:$0xff]  ;;  %vm345_vm1 = vcmask 31744   ;;  %vm342_vm2 = vcmask 1040384   ;;  %vm372_vm3 = vcmask 25600  }
  0x42   : > { %636 = vmatpush.xpose.msk.msra.mxu0 %vm345_vm1, %v344_v12  ;;  %v336_v15 = vand.u32 127, %v335_v14  ;;  %vm402_vm8 = vcmask 24576   ;;  %s418_s7 = sld [smem:[#allocation2]]  ;;  %s649_s18 = sshll.u32 %s1030_s27, 3 }
  0x43   : > { %s465_s28 = scalar_lea.hbm %s1178_s4, %s649_s18  ;;  %s480_s10 = scalar_lea.hbm %s1179_s5, %s649_s18 }
  0x44   : > { %s299_s27 = scalar_lea.vmem [#allocation9], %s1098_s12  ;;  %s469_s29 = sshll.u32 %s465_s28, 4  ;;  %s470_s29 = int_to_ptr.hbm [resolvable:$true] %s469_s29 }
  0x45   : > { %s467_s11 = sshll.u32 %s299_s27, 4  ;;  %s306_s17 = scalar_lea.vmem [#allocation10], %s1098_s12  ;;  %s468_s11 = int_to_ptr.vmem [resolvable:$true] %s467_s11 }
  0x46   : > { %s1123_s24 = sshll.u32 %s306_s17, 4  ;;  %s484_s16 = sshll.u32 %s480_s10, 4  ;;  %s483_s24 = int_to_ptr.vmem [resolvable:$true] %s1123_s24  ;;  %s1128_s16 = int_to_ptr.hbm [resolvable:$true] %s484_s16 }
  0x47   : > { %s449_s13 = scalar_lea.sflag [#allocation5], %s1095_s6  ;;  %s832_s14 = sshra.s32 %s470_s29, 4  ;;  %s833_s14 = int_to_ptr.hbm [resolvable:$true] %s832_s14 }
  0x48   : > { %v311_v2 = vld.sshfl [vmem:[#allocation1] sm:$0xff pattern:$0x75316420]  ;;  %v312_v3 = vld.sshfl [vmem:[#allocation1 + $0x8] sm:$0xff pattern:$0x75316420]  ;;  %v420_v55 = vstv %s418_s7  ;;  %p839_p9 = scmp.lt.s32.totalorder %s833_s14, %s1178_s4 }
  0x49   : > { %v316_v4 = vsel %vm315_vm0, %v311_v2, 0.0  ;;  %v317_v5 = vsel %vm315_vm0, %v312_v3, 0.0  ;;  %323 = vst [vmem:[#allocation1] ss:$2 sm:$0xff] %v1109_v1  ;;  %s834_s7 = scalar_lea.hbm %s833_s14, 8  ;;  %s838_s19 = scalar_lea.hbm %s1178_s4, 16 }
  0x4a   : > { %v318_v6 = vadd.f32 %v317_v5, %v316_v4  ;;  %p835_p3 = scmp.ne.s32.totalorder %s833_s14, %s834_s7  ;;  %p840_p1 = scmp.lt.s32.totalorder %s838_s19, %s834_s7 }
  0x4c   : > { %319 = vadd.xlane.f32.xlu0 %v318_v6  ;;  %p836_p6 = pnand %p835_p3, %p1047_p11  ;;  %p841_p2 = por %p840_p1, %p839_p9 }
  0x4e   : > { %p837_p4 = pneg %p836_p6 }
  0x50   : > { %v324_v7 = vld.sshfl [vmem:[#allocation1] sm:$0xff pattern:$0x75316420]  ;;  %v325_v8 = vld.sshfl [vmem:[#allocation1 + $0x8] sm:$0xff pattern:$0x75316420]  ;;  %p842_p7 = pnand %p841_p2, %p837_p4 }
  0x51   : > { %v328_v9 = vsel %vm315_vm0, %v324_v7, 0.0  ;;  %v329_v10 = vsel %vm315_vm0, %v325_v8, 0.0 }
  0x52   : > { %v330_v11 = vadd.f32 %v329_v10, %v328_v9  ;;  %v441_v9 = vsub.f32 %v1109_v1, %v1105_v0 }
  0x54   : > { %331 = vadd.xlane.f32.xlu0 %v330_v11 }
  0xbf   : > { %v320_v13 = vpop.xlane.xlu0 %319 }
  0xc0   : > { %v321_v16 = vmul.f32 0.00390625, %v320_v13 }
  0xc2   : > { %v337_v19 = vperm.slane %v321_v16, %v336_v15 }
  0xc7   : > { %v332_v17 = vpop.xlane.xlu0 %331 }
  0xc8   : > { %v333_v18 = vmul.f32 0.00390625, %v332_v17 }
  0xca   : > { %v340_v20 = vperm.slane %v333_v18, %v336_v15 }
  0xcc   : > { %v343_v21 = vsel %vm342_vm2, %v337_v19, %v340_v20 }
  0xcd   : > { %637 = vmatmul.msk.f32.vlgmr.msra.gmra.mxu0 %vm345_vm1, %v343_v21 }
 0x14a   : > { %v369_v22 = vpop.f32.mrf.mxu0 }
 0x14b   : > { %v373_v23 = vsel %vm372_vm3, %v369_v22, -inf }
 0x14c   : > { %374 = vmax.xlane.f32.xlu1 %v373_v23 }
 0x1bf   : > { %v375_v24 = vpop.xlane.xlu1 %374 }
 0x1c0   : > { %v376_v25 = vsub.f32 %v369_v22, %v375_v24 }
 0x1c2   : > { %v377_v26 = vmul.f32 1.442695, %v376_v25 }
 0x1c4   : > { %718 = vpow2.f32 %v377_v26 }
 0x1ca   : > { %v719_v27 = vpop.eup %718 }
 0x1cb   : > { %v379_v28 = vsel %vm372_vm3, %v719_v27, 0.0 }
 0x1cc   : > { %380 = vadd.xlane.f32.xlu1 %v379_v28 }
 0x23f   : > { %v381_v29 = vpop.xlane.xlu1 %380 }
 0x240   : > { %720 = vrcp.f32 %v381_v29  ;;  %v393_v33 = vand.u32 2147483648, %v381_v29  ;;  %v391_v35 = vand.u32 2147483647, %v381_v29  ;;  %vm387_vm5 = vweird.f32 %v381_v29 }
 0x242   : > { %v394_v37 = vor.u32 1.1754944e-38, %v393_v33  ;;  %vm392_vm7 = vcmp.eq.f32.partialorder %v391_v35, 8.507059e+37 }
 0x246   : > { %v721_v30 = vpop.eup %720 }
 0x247   : > { %v383_v31 = vmul.f32 %v721_v30, %v381_v29  ;;  %vm388_vm4 = vweird.f32 %v721_v30 }
 0x248   : > { %vm389_vm6 = vmor %vm387_vm5, %vm388_vm4 }
 0x249   : > { %v384_v32 = vsub.f32 1.0, %v383_v31 }
 0x24b   : > { %v385_v34 = vmul.f32 %v721_v30, %v384_v32 }
 0x24d   : > { %v386_v36 = vadd.f32 %v721_v30, %v385_v34 }
 0x24f   : > { %v390_v38 = vsel %vm389_vm6, %v721_v30, %v386_v36 }
 0x250   : > { %v395_v39 = vsel %vm392_vm7, %v394_v37, %v390_v38 }
 0x251   : > { %v396_v40 = vmul.f32 %v719_v27, %v395_v39 }
 0x253   : > { %v398_v41 = vrot.slane %v396_v40, 1 }
 0x255   : > { %v400_v42 = vsub.f32 %v396_v40, %v398_v41 }
 0x257   : > { %v401_v43 = vmul.f32 %v400_v42, %v400_v42 }
 0x259   : > { %v403_v44 = vsel %vm402_vm8, %v401_v43, 0.0 }
 0x25a   : > { %404 = vadd.xlane.f32.xlu2 %v403_v44 }
 0x2cd   : > { %v405_v45 = vpop.xlane.xlu2 %404 }
 0x2ce   : > { %722 = vrsqrt.f32 %v405_v45  ;;  %vm413_vm9 = vcmp.eq.f32.partialorder %v405_v45, inf  ;;  %v416_v53 = vand.u32 2147483648, %v405_v45  ;;  %vm415_vm10 = vcmp.eq.f32.partialorder %v405_v45, 0.0 }
 0x2d4   : > { %v723_v46 = vpop.eup %722 }
 0x2d5   : > { %v407_v47 = vmul.f32 %v723_v46, %v405_v45 }
 0x2d7   : > { %v408_v48 = vmul.f32 %v723_v46, %v407_v47 }
 0x2d9   : > { %v409_v49 = vmul.f32 0.5, %v408_v48 }
 0x2db   : > { %v410_v50 = vsub.f32 1.5, %v409_v49 }
 0x2dd   : > { %v411_v51 = vmul.f32 %v723_v46, %v410_v50 }
 0x2df   : > { %v412_v52 = vmul.f32 %v411_v51, %v405_v45 }
 0x2e1   : > { %v414_v54 = vsel %vm413_vm9, %v405_v45, %v412_v52 }
 0x2e2   : > { %v417_v56 = vsel %vm415_vm10, %v416_v53, %v414_v54 }
 0x2e3   : > { %v419_v57 = vsub.f32 %v417_v56, %v417_v56 }
 0x2e5   : > { %v421_v58 = vmul.f32 %v420_v55, %v419_v57 }
 0x2e7   : > { %v638_v59 = vmul.f32 -1.442695, %v421_v58 }
 0x2e9   : > { %724 = vpow2.f32 %v638_v59 }
 0x2ef   : > { %v725_v60 = vpop.eup %724 }
 0x2f0   : > { %v425_v61 = vadd.f32 1.0, %v725_v60 }
 0x2f2   : > { %726 = vrcp.f32 %v425_v61  ;;  %v437_v3 = vand.u32 2147483648, %v425_v61  ;;  %v435_v5 = vand.u32 2147483647, %v425_v61  ;;  %vm431_vm12 = vweird.f32 %v425_v61 }
 0x2f4   : > { %v438_v7 = vor.u32 1.1754944e-38, %v437_v3  ;;  %vm436_vm14 = vcmp.eq.f32.partialorder %v435_v5, 8.507059e+37 }
 0x2f8   : > { %v727_v62 = vpop.eup %726 }
 0x2f9   : > { %v427_v63 = vmul.f32 %v727_v62, %v425_v61  ;;  %vm432_vm11 = vweird.f32 %v727_v62 }
 0x2fa   : > { %vm433_vm13 = vmor %vm431_vm12, %vm432_vm11 }
 0x2fb   : > { %v428_v2 = vsub.f32 1.0, %v427_v63 }
 0x2fd   : > { %v429_v4 = vmul.f32 %v727_v62, %v428_v2 }
 0x2ff   : > { %v430_v6 = vadd.f32 %v727_v62, %v429_v4 }
 0x301   : > { %v434_v8 = vsel %vm433_vm13, %v727_v62, %v430_v6 }
 0x302   : > { %v439_v10 = vsel %vm436_vm14, %v438_v7, %v434_v8 }
 0x303   : > { %v442_v11 = vperm.slane %v439_v10, 0 }
 0x305   : > { %v443_v12 = vmul.f32 %v442_v11, %v441_v9 }
 0x307   : > { %v444_v13 = vadd.f32 %v443_v12, %v1105_v0  ;;  %v446_v14 = vsub.f32 %v1109_v1, %v443_v12 }
 0x309   : > { %445 = vst [vmem:[%s299_s27] sm:$0xff] %v444_v13 }
 0x30a   : > { %845 = shalt.err (!%p842_p7)
}
 0x30b   : > { %659 = dma.vmem_to_hbm [thread:$0]  (%p1047_p11), %s468_s11, 128, %s470_s29, %s449_s13   ;;  %447 = vst [vmem:[%s306_s17] sm:$0xff] %v446_v14 }
 0x30c   : > { %s454_s30 = scalar_lea.sflag [#allocation11], %s1095_s6  ;;  %s860_s15 = sshra.s32 %s1128_s16, 4  ;;  %s861_s15 = int_to_ptr.hbm [resolvable:$true] %s860_s15 }
 0x30d   : > { %s862_s10 = scalar_lea.hbm %s861_s15, 8  ;;  %s866_s7 = scalar_lea.hbm %s1179_s5, 16 }
 0x30e   : > { %p863_p10 = scmp.ne.s32.totalorder %s861_s15, %s862_s10  ;;  %p867_p8 = scmp.lt.s32.totalorder %s861_s15, %s1179_s5 }
 0x30f   : > { %p868_p5 = scmp.lt.s32.totalorder %s866_s7, %s862_s10 }
 0x310   : > { %p864_p13 = pnand %p863_p10, %p1047_p11 }
 0x311   : > { %p869_p3 = por %p868_p5, %p867_p8 }
 0x312   : > { %p865_p0 = pneg %p864_p13 }
 0x314   : > { %p870_p6 = pnand %p869_p3, %p865_p0 }
 0x316   : > { %873 = shalt.err (!%p870_p6)
}
 0x317   : > { %660 = dma.vmem_to_hbm [thread:$0]  (%p1047_p11), %s483_s24, 128, %s1128_s16, %s454_s30  }
 0x318 PF: > { %s496_s6 = sand.u32 1, %s908_s20   ;;  %p1189_p4 = scmp.ge.s32.totalorder %s920_s23, 2 }
 0x319   : > { %s497_s11 = scalar_lea.sflag [#allocation5], %s496_s6 }
 0x31a   : > { %p675_p9 = pnand %p1189_p4, %p1051_p12 }
 0x31c   : > { %p676_p1 = pneg %p675_p9 }
 0x31e   : > { %899 = dma.done.wait (%p676_p1), %s497_s11, 128  }
 0x31f   : > { %901 = vsyncadd (%p676_p1), %s497_s11, 4294967168  ;;  %s507_s29 = scalar_lea.sflag [#allocation11], %s496_s6 }
 0x320   : > { %903 = dma.done.wait (%p676_p1), %s507_s29, 128  }
 0x321   : > { %905 = vsyncadd (%p676_p1), %s507_s29, 4294967168  ;;  %p24_p11 = scmp.ge.s32.totalorder %s977_s0, 4   ;;  %s1190_s20 = smov %s912_s21 }
 0x322   : > { %s1191_s21 = smov %s916_s22  ;;  %s1192_s22 = smov %s988_s26 }
 0x323   : > { %s1193_s23 = smov %s977_s0  ;;  %26 = sbr.rel (!%p24_p11) target bundleno = 10 (0xa), region = 114 }
 0x328   :  { %513 = vsyncpa [#allocation4], 1 }
 0x329   :  { %515 = vsyncpa [#allocation4 + $0x1], 1 }
 0x32a   :  { %516 = vsyncpa [#allocation7], 1 }
 0x32b   :  { %518 = vsyncpa [#allocation7 + $0x1], 1 }
 0x32c   :  { %519 = vsyncpa [#allocation5], 1 }
 0x32d   :  { %521 = vsyncpa [#allocation5 + $0x1], 1 }
 0x32e   :  { %522 = vsyncpa [#allocation11], 1 }
 0x32f   :  { %524 = vsyncpa [#allocation11 + $0x1], 1 }

</bundles_post_ra>
